<compile_context>
chip_gen: v7x
topology: tpu7x:2x2x1
jax: 0.10.0
libtpu: 0.0.40
codegen_flags: <defaults>
</compile_context>

<pallas_src>
import jax
import jax.numpy as jnp
from jax import lax
from jax.experimental import pallas as pl
from jax.experimental.pallas import tpu as pltpu

N_SUBNETS = 4   # number of subnets / state dimension
HIDDEN = 32     # hidden width of each subnet MLP
STATE_BUF_LANES = 128  # one padded vreg row for the resident state buffer


def anarx_ss_rollout_kernel(u_ref, y_ref, state0_ref, w_ref, b2_ref, out_ref, st_ref):
    H = HIDDEN
    N = N_SUBNETS
    T = out_ref.shape[0]

    # Packed weight slab (4H, N): hidden unit on sublanes, subnet index on lanes.
    w1u = w_ref[0 * H:1 * H, :]   # (H, N) first-layer weights for input u
    w1y = w_ref[1 * H:2 * H, :]   # (H, N) first-layer weights for input y
    b1 = w_ref[2 * H:3 * H, :]    # (H, N) first-layer bias
    w2 = w_ref[3 * H:4 * H, :]    # (H, N) second-layer weights
    b2 = b2_ref[...]              # (1, N) second-layer bias

    # Resident state buffer: lanes [0:N] hold the current state, lanes [N:] stay 0,
    # so reading lanes [1:N+1] yields eye(N, k=1) @ state without any matmul/roll.
    st_ref[...] = jnp.zeros((1, STATE_BUF_LANES), jnp.float32)
    st_ref[:, 0:N] = state0_ref[...]

    def step(t, carry):
        u = u_ref[t]              # scalar from SMEM
        y = y_ref[t]              # scalar from SMEM

        # All subnets batched: h = tanh(u*W1u + y*W1y + b1)  -> (H, N)   (VPU + EUP)
        h = jnp.tanh(u * w1u + y * w1y + b1)
        # Second layer: per-subnet dot over hidden units (sublane reduce) -> (1, N)
        sub = jnp.sum(w2 * h, axis=0, keepdims=True) + b2

        # shifted_state = [x_1, ..., x_{N-1}, 0]
        shifted = st_ref[:, 1:N + 1]
        nxt = shifted + sub                                   # (1, N)

        st_ref[:, 0:N] = nxt                                  # state stays VMEM-resident
        out_ref[pl.ds(t, 1), :] = nxt                         # row t of the (T, N) slab
        return carry

    lax.fori_loop(0, T, step, 0)


def anarx_ss_rollout(state0, y_seq, u_seq, packed_params):
    """Open-loop rollout. state0: (N,), y_seq/u_seq: (T,). Returns (T, N); row t = state after step t."""
    w_slab, b2_row = packed_params
    T = int(u_seq.shape[0])
    vmem = pl.BlockSpec(memory_space=pltpu.MemorySpace.VMEM)
    smem = pl.BlockSpec(memory_space=pltpu.MemorySpace.SMEM)
    return pl.pallas_call(
        anarx_ss_rollout_kernel,
        out_shape=jax.ShapeDtypeStruct((T, N_SUBNETS), jnp.float32),
        in_specs=[smem, smem, vmem, vmem, vmem],
        out_specs=vmem,
        scratch_shapes=[pltpu.VMEM((1, STATE_BUF_LANES), jnp.float32)],
    )(u_seq.astype(jnp.float32), y_seq.astype(jnp.float32),
      state0.reshape(1, N_SUBNETS).astype(jnp.float32), w_slab, b2_row)


def anarx_ss_step(state, y, u, packed_params):
    """Single prediction step, matching the PyTorch forward(state, y, u) -> next_state."""
    traj = anarx_ss_rollout(state, y.reshape(1), u.reshape(1), packed_params)
    return traj[0]


def make_params(key, lag_flags):
    """Deterministic synthetic subnet weights (Linear(in, H) -> tanh -> Linear(H, 1))."""
    k1, k2, k3, k4, k5 = jax.random.split(key, 5)
    scale = 0.4
    w1u = scale * jax.random.normal(k1, (N_SUBNETS, HIDDEN), jnp.float32)
    w1y = scale * jax.random.normal(k2, (N_SUBNETS, HIDDEN), jnp.float32)
    b1 = scale * jax.random.normal(k3, (N_SUBNETS, HIDDEN), jnp.float32)
    w2 = scale * jax.random.normal(k4, (N_SUBNETS, HIDDEN), jnp.float32)
    b2 = scale * jax.random.normal(k5, (N_SUBNETS,), jnp.float32)
    # Subnets with lag_map[i][0] != 1 never receive u -> zero that input column.
    mask = jnp.asarray(lag_flags, jnp.float32).reshape(N_SUBNETS, 1)
    w1u = w1u * mask
    return w1u, w1y, b1, w2, b2


def pack_params(raw_params):
    """Pack per-subnet weights into one lane-layout-friendly (4H, N) slab + (1, N) bias."""
    w1u, w1y, b1, w2, b2 = raw_params
    w_slab = jnp.concatenate([w1u.T, w1y.T, b1.T, w2.T], axis=0).astype(jnp.float32)
    b2_row = b2.reshape(1, N_SUBNETS).astype(jnp.float32)
    return w_slab, b2_row


def reference_rollout(state0, y_seq, u_seq, raw_params, lag_flags):
    """Pure-JAX reference mirroring the PyTorch per-subnet loop, iterated over time."""
    w1u, w1y, b1, w2, b2 = raw_params
    sm = jnp.eye(N_SUBNETS, k=1, dtype=jnp.float32)
    state = state0
    states = []
    for t in range(u_seq.shape[0]):
        shifted = sm @ state
        outs = []
        for i in range(N_SUBNETS):
            if int(lag_flags[i]) == 1:
                inp = jnp.stack([u_seq[t], y_seq[t]])          # cat(u, y)
                W1 = jnp.stack([w1u[i], w1y[i]], axis=1)       # (H, 2)
            else:
                inp = y_seq[t].reshape(1)
                W1 = w1y[i][:, None]                           # (H, 1)
            h = jnp.tanh(W1 @ inp + b1[i])
            outs.append(jnp.dot(w2[i], h) + b2[i])
        state = shifted + jnp.stack(outs)
        states.append(state)
    return jnp.stack(states)


if __name__ == "__main__":
    key = jax.random.PRNGKey(0)
    k_state, k_y, k_u, k_params = jax.random.split(key, 4)

    T = 64
    lag_flags = (1, 0, 1, 0)   # which subnets receive the input u (lag_map[i][0] == 1)

    raw_params = make_params(k_params, lag_flags)
    packed = pack_params(raw_params)

    state0 = jax.random.normal(k_state, (N_SUBNETS,), jnp.float32)
    y_seq = jax.random.normal(k_y, (T,), jnp.float32)
    u_seq = jax.random.normal(k_u, (T,), jnp.float32)

    traj = jax.block_until_ready(anarx_ss_rollout(state0, y_seq, u_seq, packed))
    ref = reference_rollout(state0, y_seq, u_seq, raw_params, lag_flags)

    assert traj.shape == (T, N_SUBNETS)
    assert jnp.allclose(traj, ref, atol=2e-3, rtol=2e-3), (traj, ref)

    # Single-step API (the original module's forward signature) reuses the same kernel.
    nxt = jax.block_until_ready(anarx_ss_step(state0, y_seq[:1], u_seq[:1], packed))
    assert nxt.shape == (N_SUBNETS,)
    assert jnp.allclose(nxt, ref[0], atol=2e-3, rtol=2e-3), (nxt, ref[0])

    print("KERNEL_OK")
</pallas_src>

<mosaic_0001>
module attributes {stable_mosaic.version = 11 : i64} {
  func.func @anarx_ss_rollout_kernel(%arg0: memref<64xf32, #tpu.memory_space<smem>>, %arg1: memref<64xf32, #tpu.memory_space<smem>>, %arg2: memref<1x4xf32, #tpu.memory_space<vmem>>, %arg3: memref<128x4xf32, #tpu.memory_space<vmem>>, %arg4: memref<1x4xf32, #tpu.memory_space<vmem>>, %arg5: memref<64x4xf32, #tpu.memory_space<vmem>>, %arg6: memref<1x128xf32, #tpu.memory_space<vmem>>) attributes {dimension_semantics = [], scalar_prefetch = 0 : i64, scratch_operands = 1 : i64, tpu.core_type = #tpu.core_type<tc>} {
    %c0 = arith.constant 0 : index
    %c0_0 = arith.constant 0 : index
    %0 = vector.load %arg3[%c0, %c0_0] : memref<128x4xf32, #tpu.memory_space<vmem>>, vector<32x4xf32>
    %c32 = arith.constant 32 : index
    %c0_1 = arith.constant 0 : index
    %1 = vector.load %arg3[%c32, %c0_1] : memref<128x4xf32, #tpu.memory_space<vmem>>, vector<32x4xf32>
    %c64 = arith.constant 64 : index
    %c0_2 = arith.constant 0 : index
    %2 = vector.load %arg3[%c64, %c0_2] : memref<128x4xf32, #tpu.memory_space<vmem>>, vector<32x4xf32>
    %c96 = arith.constant 96 : index
    %c0_3 = arith.constant 0 : index
    %3 = vector.load %arg3[%c96, %c0_3] : memref<128x4xf32, #tpu.memory_space<vmem>>, vector<32x4xf32>
    %c0_4 = arith.constant 0 : index
    %c0_5 = arith.constant 0 : index
    %4 = vector.load %arg4[%c0_4, %c0_5] : memref<1x4xf32, #tpu.memory_space<vmem>>, vector<1x4xf32>
    %cst = arith.constant 0.000000e+00 : f32
    %5 = vector.broadcast %cst : f32 to vector<1x128xf32>
    %c0_6 = arith.constant 0 : index
    %c0_7 = arith.constant 0 : index
    %6 = vector.load %arg6[%c0_6, %c0_7] : memref<1x128xf32, #tpu.memory_space<vmem>>, vector<1x128xf32>
    tpu.vector_store %arg6[%c0_6, %c0_7], %5 {strides = array<i32>} : memref<1x128xf32, #tpu.memory_space<vmem>>, vector<1x128xf32>,
    %c0_8 = arith.constant 0 : index
    %c0_9 = arith.constant 0 : index
    %7 = vector.load %arg2[%c0_8, %c0_9] : memref<1x4xf32, #tpu.memory_space<vmem>>, vector<1x4xf32>
    %c0_10 = arith.constant 0 : index
    %c0_11 = arith.constant 0 : index
    %8 = vector.load %arg6[%c0_10, %c0_11] : memref<1x128xf32, #tpu.memory_space<vmem>>, vector<1x4xf32>
    tpu.vector_store %arg6[%c0_10, %c0_11], %7 {strides = array<i32>} : memref<1x128xf32, #tpu.memory_space<vmem>>, vector<1x4xf32>,
    %c0_i32 = arith.constant 0 : i32
    %c64_i32 = arith.constant 64 : i32
    %9 = arith.addi %c0_i32, %c64_i32 : i32
    %c1_i32 = arith.constant 1 : i32
    scf.for %arg7 = %c0_i32 to %9 step %c1_i32  : i32 {
      %10 = arith.index_cast %arg7 : i32 to index
      %11 = memref.load %arg0[%10] : memref<64xf32, #tpu.memory_space<smem>>
      %12 = arith.index_cast %arg7 : i32 to index
      %13 = memref.load %arg1[%12] : memref<64xf32, #tpu.memory_space<smem>>
      %14 = vector.broadcast %11 : f32 to vector<32x4xf32>
      %15 = arith.mulf %14, %0 : vector<32x4xf32>
      %16 = vector.broadcast %13 : f32 to vector<32x4xf32>
      %17 = arith.mulf %16, %1 : vector<32x4xf32>
      %18 = arith.addf %15, %17 : vector<32x4xf32>
      %19 = arith.addf %18, %2 : vector<32x4xf32>
      %20 = math.tanh %19 : vector<32x4xf32>
      %21 = arith.mulf %3, %20 : vector<32x4xf32>
      %cst_13 = arith.constant dense<0.000000e+00> : vector<4xf32>
      %22 = vector.multi_reduction <add>, %21, %cst_13 [0] : vector<32x4xf32> to vector<4xf32>
      %23 = vector.shape_cast %22 : vector<4xf32> to vector<1x4xf32>
      %24 = arith.addf %23, %4 : vector<1x4xf32>
      %c0_14 = arith.constant 0 : index
      %c1 = arith.constant 1 : index
      %25 = vector.load %arg6[%c0_14, %c1] : memref<1x128xf32, #tpu.memory_space<vmem>>, vector<1x4xf32>
      %26 = arith.addf %25, %24 : vector<1x4xf32>
      %c0_15 = arith.constant 0 : index
      %c0_16 = arith.constant 0 : index
      %27 = vector.load %arg6[%c0_15, %c0_16] : memref<1x128xf32, #tpu.memory_space<vmem>>, vector<1x4xf32>
      tpu.vector_store %arg6[%c0_15, %c0_16], %26 {strides = array<i32>} : memref<1x128xf32, #tpu.memory_space<vmem>>, vector<1x4xf32>,
      %28 = arith.index_cast %arg7 : i32 to index
      %c0_17 = arith.constant 0 : index
      %29 = vector.load %arg5[%28, %c0_17] : memref<64x4xf32, #tpu.memory_space<vmem>>, vector<1x4xf32>
      tpu.vector_store %arg5[%28, %c0_17], %26 {strides = array<i32>} : memref<64x4xf32, #tpu.memory_space<vmem>>, vector<1x4xf32>,
    }
    %c64_i32_12 = arith.constant 64 : i32
    return
  }
}

</mosaic_0001>

<bundles_post_ra>
// kernel: tpu_custom_call.1
= control target key start
LH: loop header
LB: loop body
LE: loop exit
PB: predicated region body
PF: predicated region fallthrough
CT: control target
= control target key end

     0   :  { %10 = vsyncpa [#allocation4], 0  ;;  %s380_s0 = inlined_call_operand.vmem [shape: f32[64], index: 0, kind: input, shape index: {}]   ;;  %s381_s1 = inlined_call_operand.vmem [shape: f32[64], index: 1, kind: input, shape index: {}]   ;;  %s382_s2 = inlined_call_operand.vmem [shape: f32[1,4], index: 2, kind: input, shape index: {}]   ;;  %s383_s3 = inlined_call_operand.vmem [shape: f32[128,4], index: 3, kind: input, shape index: {}]   ;;  %s384_s4 = inlined_call_operand.vmem [shape: f32[1,4], index: 4, kind: input, shape index: {}]   ;;  %s385_s5 = inlined_call_operand.vmem [shape: f32[64,4], index: 5, kind: output, shape index: {}]  }
   0x1   :  { %s18_s20 = sshll.u32 %s380_s0, 4  ;;  %s19_s20 = int_to_ptr.vmem [resolvable:$true] %s18_s20 }
   0x2   :  { %11 = vsyncpa [#allocation6], 0  ;;  %s28_s23 = sshll.u32 %s381_s1, 4  ;;  %s180_s24 = scalar_lea.vmem %s19_s20, 16  ;;  %s29_s23 = int_to_ptr.vmem [resolvable:$true] %s28_s23 }
   0x3   :  { %p181_p0 = scmp.ne.s32.totalorder %s19_s20, %s180_s24  ;;  %p185_p1 = scmp.lt.s32.totalorder %s19_s20, %s19_s20 }
   0x4   :  { %p186_p2 = scmp.lt.s32.totalorder %s180_s24, %s180_s24 }
   0x6   :  { %p187_p3 = por %p186_p2, %p185_p1 }
   0x8   :  { %p188_p4 = pnand %p187_p3, %p181_p0 }
   0xa   :  { %191 = shalt.err (!%p188_p4)
}
   0xb   :  { %s216_s25 = smov [#allocation3]   ;;  %s192_s26 = scalar_lea.vmem %s29_s23, 16 }
   0xc   :  { %21 = dma.vmem_to_smem %s19_s20, 16, %s216_s25, [#allocation4]  }
   0xd   :  { %p193_p5 = scmp.ne.s32.totalorder %s29_s23, %s192_s26  ;;  %p197_p6 = scmp.lt.s32.totalorder %s29_s23, %s29_s23 }
   0xe   :  { %p198_p7 = scmp.lt.s32.totalorder %s192_s26, %s192_s26 }
  0x10   :  { %p199_p8 = por %p198_p7, %p197_p6 }
  0x12   :  { %p200_p9 = pnand %p199_p8, %p193_p5 }
  0x14   :  { %203 = shalt.err (!%p200_p9)
}
  0x15   :  { %s217_s0 = smov [#allocation5]  }
  0x16   :  { %31 = dma.vmem_to_smem %s29_s23, 16, %s217_s0, [#allocation6]  }
  0x17   :  { %208 = dma.done.wait [#allocation4], 16  }
  0x18   :  { %209 = vsyncadd [#allocation4], 4294967280 }
  0x19   :  { %210 = dma.done.wait [#allocation6], 16  }
  0x1a   :  { %211 = vsyncadd [#allocation6], 4294967280 }
  0x1b   :  { %44 = sfence }
  0x1c   :  { %v261_v0 = vld [vmem:[%s383_s3] sm:$0xff]  ;;  %v266_v1 = vld [vmem:[%s383_s3 + $0x8] sm:$0xff]  ;;  %v271_v2 = vld [vmem:[%s383_s3 + $0x10] sm:$0xff]  ;;  %v218_v6 = vmov 0.0   ;;  %vm64_vm0 = vcmask 24576   ;;  %s347_s10 = smov 0  }
  0x1d   :  { %v276_v3 = vld [vmem:[%s383_s3 + $0x18] sm:$0xff]  ;;  %v281_v4 = vld [vmem:[%s383_s3 + $0x20] sm:$0xff]  ;;  %v286_v5 = vld [vmem:[%s383_s3 + $0x28] sm:$0xff]  ;;  %62 = vst [vmem:[#allocation2] sm:$0x1] %v218_v6 }
  0x1e   :  { %v291_v7 = vld [vmem:[%s383_s3 + $0x30] sm:$0xff]  ;;  %v296_v8 = vld [vmem:[%s383_s3 + $0x38] sm:$0xff]  ;;  %v301_v9 = vld [vmem:[%s383_s3 + $0x40] sm:$0xff] }
  0x1f   :  { %v306_v10 = vld [vmem:[%s383_s3 + $0x48] sm:$0xff]  ;;  %v311_v11 = vld [vmem:[%s383_s3 + $0x50] sm:$0xff]  ;;  %v316_v12 = vld [vmem:[%s383_s3 + $0x58] sm:$0xff] }
  0x20   :  { %v321_v13 = vld [vmem:[%s383_s3 + $0x60] sm:$0xff]  ;;  %v326_v14 = vld [vmem:[%s383_s3 + $0x68] sm:$0xff]  ;;  %v331_v15 = vld [vmem:[%s383_s3 + $0x70] sm:$0xff] }
  0x21   :  { %v336_v16 = vld [vmem:[%s383_s3 + $0x78] sm:$0xff]  ;;  %v341_v17 = vld [vmem:[%s384_s4] sm:$0x1] }
  0x22   :  { %v63_v18 = vld [vmem:[%s382_s2] sm:$0x1] }
  0x23   :  { %65 = vst.msk [vmem:[#allocation2] sm:$0x1] %vm64_vm0, %v63_v18 }
  0x24 LB: > { %s72_s3 = sld [smem:[#allocation3 + %s214_s10]]  ;;  %vm100_vm1 = vcmask 31744   ;;  %v219_v54 = vmov 1966171168   ;;  %v120_v56 = vlaneseq  ;;  %s220_s2 = smov 1   ;;  %s214_s10 = sphi %s347_s10, %s71_s10  }
  0x25   : > { %s73_s11 = sld [smem:[#allocation5 + %s214_s10]]  ;;  %v118_v55 = vunpack.c.l.s4 %v219_v54  ;;  %s221_s4 = smov 127  }
  0x26   : > { %v121_v60 = vshrl.u32 %v120_v56, 7  ;;  %s144_s14 = scalar_lea.vmem %s385_s5, %s214_s10  ;;  %s71_s10 = sadd.s32 1, %s214_s10  }
  0x27   : > { %v119_v59 = vunpack.c.0.s8 %v118_v55  ;;  %p68_p10 = scmp.ge.s32.totalorder %s71_s10, 64  }
  0x29   : > { %v122_v63 = vsub.s32 %v119_v59, %v121_v60 }
  0x2a   : > { %v74_v19 = vstv %s72_s3 }
  0x2b   : > { %v79_v20 = vstv %s73_s11  ;;  %v75_v21 = vmul.f32 %v74_v19, %v261_v0  ;;  %v76_v22 = vmul.f32 %v74_v19, %v266_v1  ;;  %v77_v23 = vmul.f32 %v74_v19, %v271_v2 }
  0x2c   : > { %v78_v24 = vmul.f32 %v74_v19, %v276_v3  ;;  %v80_v25 = vmul.f32 %v79_v20, %v281_v4  ;;  %v81_v26 = vmul.f32 %v79_v20, %v286_v5  ;;  %v82_v27 = vmul.f32 %v79_v20, %v291_v7 }
  0x2d   : > { %v83_v28 = vmul.f32 %v79_v20, %v296_v8  ;;  %v115_v20 = vld [vmem:[#allocation2] sm:$0x1] }
  0x2e   : > { %v84_v29 = vadd.f32 %v80_v25, %v75_v21  ;;  %v85_v30 = vadd.f32 %v81_v26, %v76_v22  ;;  %v86_v31 = vadd.f32 %v82_v27, %v77_v23  ;;  %v138_v21 = vsub.s32 0, %v121_v60 }
  0x2f   : > { %v87_v32 = vadd.f32 %v83_v28, %v78_v24 }
  0x30   : > { %v88_v33 = vadd.f32 %v84_v29, %v301_v9  ;;  %v89_v34 = vadd.f32 %v85_v30, %v306_v10  ;;  %v90_v35 = vadd.f32 %v86_v31, %v311_v11 }
  0x31   : > { %v91_v36 = vadd.f32 %v87_v32, %v316_v12 }
  0x32   : > { %172 = vtanh.f32 %v88_v33 }
  0x33   : > { %174 = vtanh.f32 %v89_v34 }
  0x34   : > { %176 = vtanh.f32 %v90_v35 }
  0x35   : > { %178 = vtanh.f32 %v91_v36 }
  0x3c   : > { %v173_v37 = vpop.eup %172 }
  0x3d   : > { %v175_v38 = vpop.eup %174  ;;  %v96_v39 = vmul.f32 %v173_v37, %v321_v13 }
  0x3e   : > { %v177_v40 = vpop.eup %176  ;;  %v97_v41 = vmul.f32 %v175_v38, %v326_v14 }
  0x3f   : > { %v179_v42 = vpop.eup %178  ;;  %v98_v43 = vmul.f32 %v177_v40, %v331_v15  ;;  %v101_v44 = vsel %vm100_vm1, %v96_v39, 0.0 }
  0x40   : > { %v99_v45 = vmul.f32 %v179_v42, %v336_v16  ;;  %v102_v46 = vsel %vm100_vm1, %v97_v41, 0.0 }
  0x41   : > { %v103_v47 = vadd.f32 %v102_v46, %v101_v44  ;;  %v104_v48 = vsel %vm100_vm1, %v98_v43, 0.0 }
  0x42   : > { %v106_v49 = vsel %vm100_vm1, %v99_v45, 0.0 }
  0x43   : > { %v105_v50 = vadd.f32 %v104_v48, %v103_v47 }
  0x45   : > { %v107_v51 = vadd.f32 %v106_v49, %v105_v50 }
  0x47   : > { %v108_v52 = vrot.slane %v107_v51, 4 }
  0x49   : > { %v109_v53 = vadd.f32 %v108_v52, %v107_v51 }
  0x4b   : > { %v110_v57 = vrot.slane %v109_v53, 2 }
  0x4d   : > { %v111_v58 = vadd.f32 %v110_v57, %v109_v53 }
  0x4f   : > { %v112_v61 = vrot.slane %v111_v58, 1 }
  0x51   : > { %v113_v62 = vadd.f32 %v112_v61, %v111_v58 }
  0x53   : > { %v114_v6 = vadd.f32 %v113_v62, %v341_v17 }
  0x55   : > { %v123_v18 = vrot.slane %v114_v6, %v122_v63 }
  0x57   : > { %v130_v19 = vrot.slane %v123_v18, %v122_v63 }
  0x59   : > { %131 = vrot.lane.b32.xlu0 %v130_v19, %s220_s2 }
  0xcb   : > { %v132_v22 = vpop.permute.xlu0 %131 }
  0xcc   : > { %v134_v23 = vadd.f32 %v132_v22, %v115_v20 }
  0xce   : > { %v139_v24 = vrot.slane %v134_v23, %v138_v21 }
  0xd0   : > { %140 = vrot.lane.b32.xlu0 %v139_v24, %s221_s4 }
 0x13d   :  { %70 = sbr.rel (!%p68_p10) target bundleno = 36 (0x24), region = 56 }
 0x142   : > { %v141_v25 = vpop.permute.xlu0 %140 }
 0x143   : > { %143 = vst.msk [vmem:[#allocation2] sm:$0x1] %vm64_vm0, %v141_v25  ;;  %145 = vst.msk [vmem:[%s144_s14] sm:$0x1] %vm64_vm0, %v141_v25 }
 0x144   :  { %150 = vsyncpa [#allocation4], 1 }
 0x145   :  { %151 = vsyncpa [#allocation6], 1 }

</bundles_post_ra>
